<compile_context>
chip_gen: v5e
topology: v5e:2x2
jax: 0.10.0
libtpu: 0.0.40
codegen_flags: <defaults>
</compile_context>

<pallas_src>
import math

import jax
import jax.numpy as jnp
from jax.experimental import pallas as pl
from jax.experimental.pallas import tpu as pltpu

LANES = 128  # lane width of the packed parameter slab / padded output


def _round_up(v, m):
    return (v + m - 1) // m * m


def _pad2d(a, rows, cols):
    r, c = a.shape
    assert r <= rows and c <= cols, (a.shape, rows, cols)
    return jnp.pad(a, ((0, rows - r), (0, cols - c)))


# ----------------------------------------------------------------------------
# Parameter packing: 19 arrays -> ONE contiguous f32 slab (done once, offline).
# ----------------------------------------------------------------------------
def pack_params(params, actions, emb, layer, n):
    # Every weight block must fit inside the 128-lane slab.
    assert emb <= LANES, f"emb={emb} must be <= {LANES}"
    assert layer <= LANES, f"layer={layer} must be <= {LANES}"
    assert n <= LANES, f"n={n} must be <= {LANES}"

    scale = 1.0 / math.sqrt(emb)  # fold attention 1/sqrt(E) into Q projection

    blocks = [
        params['wq'] * scale,   # (E, E)
        params['wk'],           # (E, E)
        params['wv'],           # (E, E)
        params['wo'],           # (E, E)
        params['w1x'],          # (A, LAYER)  fc-head, x part
        params['w1h'],          # (E, LAYER)  fc-head, pooled part
        params['wr1'],          # (LAYER, LAYER)
        params['wr2'],          # (LAYER, LAYER)
        params['w2'],           # (LAYER, n) -> zero-padded to (LAYER, 128)
    ]
    row_offs, padded, off = [], [], 0
    for wb in blocks:
        rpad = _round_up(wb.shape[0], 8)            # sublane-aligned row blocks
        row_offs.append(off)
        padded.append(_pad2d(wb, rpad, LANES))
        off += rpad

    # Bias rows appended to the bottom of the SAME slab (one DMA total).
    biases = [params['bq'] * scale, params['bk'], params['bv'], params['bo'],
              params['b1'], params['br1'], params['br2'], params['b2']]
    b_off = off
    b_rows = [_pad2d(bb, 1, LANES) for bb in biases]
    pad_rows = _round_up(len(biases), 8) - len(biases)
    if pad_rows:
        b_rows.append(jnp.zeros((pad_rows, LANES), jnp.float32))
    padded.append(jnp.concatenate(b_rows, axis=0))

    slab = jnp.concatenate(padded, axis=0).astype(jnp.float32)   # (rows, 128)

    return {
        'w': slab,
        'offs': tuple(row_offs),
        'b_off': b_off,
        'actions': actions,
        'emb': emb,
        'layer': layer,
        'n': n,
    }


# ----------------------------------------------------------------------------
# Fused kernel (everything fits comfortably in VMEM; no grid).
# ----------------------------------------------------------------------------
def make_spline_head_kernel(B, A, E, LAYER, row_offs, b_off):
    o_q, o_k, o_v, o_wo, o_w1x, o_w1h, o_r1, o_r2, o_w2 = row_offs

    def kernel(x_ref, xemb_ref, w_ref, out_ref):
        f32 = jnp.float32

        # -- static slices out of the single packed slab ----------------------
        wq = w_ref[o_q:o_q + E, 0:E]          # Q already scaled by 1/sqrt(E)
        wk = w_ref[o_k:o_k + E, 0:E]
        wv = w_ref[o_v:o_v + E, 0:E]
        wo = w_ref[o_wo:o_wo + E, 0:E]
        w1x = w_ref[o_w1x:o_w1x + A, 0:LAYER]
        w1h = w_ref[o_w1h:o_w1h + E, 0:LAYER]
        wr1 = w_ref[o_r1:o_r1 + LAYER, 0:LAYER]
        wr2 = w_ref[o_r2:o_r2 + LAYER, 0:LAYER]
        w2 = w_ref[o_w2:o_w2 + LAYER, :]      # (LAYER, 128); cols >= n are zero

        bq = w_ref[b_off + 0:b_off + 1, 0:E]  # already scaled by 1/sqrt(E)
        bk = w_ref[b_off + 1:b_off + 2, 0:E]
        bv = w_ref[b_off + 2:b_off + 3, 0:E]
        bo = w_ref[b_off + 3:b_off + 4, 0:E]
        b1 = w_ref[b_off + 4:b_off + 5, 0:LAYER]
        br1 = w_ref[b_off + 5:b_off + 6, 0:LAYER]
        br2 = w_ref[b_off + 6:b_off + 7, 0:LAYER]
        b2 = w_ref[b_off + 7:b_off + 8, :]    # (1, 128)

        # -- GlobalBlock: 1x1 convs as flat 2-D matmuls (lane-aligned weights) -
        h = xemb_ref[...]                             # (B, L, C), L = actions
        hr = jnp.maximum(h, 0.0).reshape(B * A, E)    # ReLU before each 1x1 conv

        q = (jnp.dot(hr, wq, preferred_element_type=f32) + bq).reshape(B, A, E)
        k = (jnp.dot(hr, wk, preferred_element_type=f32) + bk).reshape(B, A, E)
        v = (jnp.dot(hr, wv, preferred_element_type=f32) + bv).reshape(B, A, E)

        # scores already carry the 1/sqrt(E) scale (folded into wq/bq).
        scores = jnp.einsum('blc,bmc->blm', q, k, preferred_element_type=f32)
        m = jnp.max(scores, axis=-1, keepdims=True)
        e = jnp.exp(scores - m)
        a = e * pl.reciprocal(jnp.sum(e, axis=-1, keepdims=True), approx=True)

        r = jnp.einsum('blm,bmc->blc', a, v, preferred_element_type=f32)
        r = jnp.maximum(r, 0.0).reshape(B * A, E)
        r = (jnp.dot(r, wo, preferred_element_type=f32) + bo).reshape(B, A, E)

        pooled = jnp.mean(h + r, axis=1)      # AdaptiveAvgPool1d(1) -> (B, E)

        # -- fc head: cat([x, pooled]) split into two matmuls -----------------
        z = (jnp.dot(x_ref[...], w1x, preferred_element_type=f32)
             + jnp.dot(pooled, w1h, preferred_element_type=f32) + b1)

        # Single ResBlock (n_res = 1, the module default).
        t = jnp.maximum(z, 0.0)
        t = jnp.dot(t, wr1, preferred_element_type=f32) + br1
        t = jnp.maximum(t, 0.0)
        t = jnp.dot(t, wr2, preferred_element_type=f32) + br2
        z = z + t

        z = jnp.maximum(z, 0.0)
        # Lane-dense (B, 128) output write; wrapper slices the first n columns.
        out_ref[...] = (jnp.dot(z, w2, preferred_element_type=f32) + b2
                        ).astype(out_ref.dtype)

    return kernel


def spline_head_forward(x, x_emb, packed):
    B, A = x.shape
    _, L, E = x_emb.shape
    LAYER, N = packed['layer'], packed['n']

    kernel = make_spline_head_kernel(B, A, E, LAYER,
                                     packed['offs'], packed['b_off'])

    vmem_spec = pl.BlockSpec(memory_space=pltpu.MemorySpace.VMEM)
    out = pl.pallas_call(
        kernel,
        out_shape=jax.ShapeDtypeStruct((B, LANES), jnp.float32),
        in_specs=[vmem_spec, vmem_spec, vmem_spec],
        out_specs=vmem_spec,
    )(x, x_emb, packed['w'])
    # torch squeeze(1): (B, 1) -> (B,) when n == 1
    return out[:, 0] if N == 1 else out[:, :N]


# ----------------------------------------------------------------------------
# Parameter init (orthogonal weights, like init_weights(..., 'ortho')).
# ----------------------------------------------------------------------------
def init_params(key, actions, emb, layer, n=1):
    ortho = jax.nn.initializers.orthogonal()
    ks = jax.random.split(key, 32)
    ki = iter(range(32))

    def linear(out_dim, in_dim):
        w = ortho(ks[next(ki)], (out_dim, in_dim), jnp.float32)   # PyTorch (out, in)
        bound = 1.0 / math.sqrt(in_dim)
        b = jax.random.uniform(ks[next(ki)], (1, out_dim), jnp.float32, -bound, bound)
        return w.T, b                                             # kernel uses (in, out)

    p = {}
    # GlobalBlock 1x1 convs (planes = emb)
    p['wq'], p['bq'] = linear(emb, emb)
    p['wk'], p['bk'] = linear(emb, emb)
    p['wv'], p['bv'] = linear(emb, emb)
    p['wo'], p['bo'] = linear(emb, emb)
    # fc: Linear(actions+emb -> layer); split weight for cat([x, pooled])
    w1, p['b1'] = linear(layer, actions + emb)
    p['w1x'], p['w1h'] = w1[:actions, :], w1[actions:, :]
    # ResBlock (n_res = 1)
    p['wr1'], p['br1'] = linear(layer, layer)
    p['wr2'], p['br2'] = linear(layer, layer)
    # final Linear(layer -> n)
    p['w2'], p['b2'] = linear(n, layer)
    return p


def reference_forward(x, x_emb, p):
    """Pure-JAX mirror of the PyTorch forward, for the correctness check."""
    h = x_emb
    hr = jnp.maximum(h, 0.0)
    q = hr @ p['wq'] + p['bq']
    k = hr @ p['wk'] + p['bk']
    v = hr @ p['wv'] + p['bv']
    C = h.shape[-1]
    s = jnp.einsum('blc,bmc->blm', q, k) / math.sqrt(C)
    a = jax.nn.softmax(s, axis=-1)
    r = jnp.einsum('blm,bmc->blc', a, v)
    r = jnp.maximum(r, 0.0) @ p['wo'] + p['bo']
    pooled = jnp.mean(h + r, axis=1)
    z = x @ p['w1x'] + pooled @ p['w1h'] + p['b1']
    t = jnp.maximum(z, 0.0) @ p['wr1'] + p['br1']
    t = jnp.maximum(t, 0.0) @ p['wr2'] + p['br2']
    z = jnp.maximum(z + t, 0.0)
    out = z @ p['w2'] + p['b2']
    return out[:, 0]


if __name__ == "__main__":
    B, ACTIONS, EMB, LAYER, N = 2, 8, 32, 32, 1

    key = jax.random.PRNGKey(0)
    k_x, k_e, k_p = jax.random.split(key, 3)
    x = jax.random.normal(k_x, (B, ACTIONS), jnp.float32)
    x_emb = jax.random.normal(k_e, (B, ACTIONS, EMB), jnp.float32)
    params = init_params(k_p, ACTIONS, EMB, LAYER, N)

    packed = pack_params(params, ACTIONS, EMB, LAYER, N)   # once, offline
    packed = jax.tree_util.tree_map(
        lambda a: jax.block_until_ready(a) if isinstance(a, jax.Array) else a, packed)

    out = spline_head_forward(x, x_emb, packed)
    out = jax.block_until_ready(out)

    ref = reference_forward(x, x_emb, params)
    assert out.shape == (B,)
    # Slightly looser tolerance than 1e-4: pl.reciprocal(approx=True) in the
    # softmax and the folded 1/sqrt(C) scale introduce ~1e-4-level deviations.
    assert jnp.allclose(out, ref, rtol=2e-3, atol=2e-3), (out, ref)

    print("KERNEL_OK")
</pallas_src>

<mosaic_0001>
module attributes {stable_mosaic.version = 11 : i64} {
  func.func @kernel(%arg0: memref<2x8xf32, #tpu.memory_space<vmem>>, %arg1: memref<2x8x32xf32, #tpu.memory_space<vmem>>, %arg2: memref<272x128xf32, #tpu.memory_space<vmem>>, %arg3: memref<2x128xf32, #tpu.memory_space<vmem>>) attributes {dimension_semantics = [], scalar_prefetch = 0 : i64, scratch_operands = 0 : i64, tpu.core_type = #tpu.core_type<tc>} {
    %c0 = arith.constant 0 : index
    %c0_0 = arith.constant 0 : index
    %0 = vector.load %arg2[%c0, %c0_0] : memref<272x128xf32, #tpu.memory_space<vmem>>, vector<32x32xf32>
    %c32 = arith.constant 32 : index
    %c0_1 = arith.constant 0 : index
    %1 = vector.load %arg2[%c32, %c0_1] : memref<272x128xf32, #tpu.memory_space<vmem>>, vector<32x32xf32>
    %c64 = arith.constant 64 : index
    %c0_2 = arith.constant 0 : index
    %2 = vector.load %arg2[%c64, %c0_2] : memref<272x128xf32, #tpu.memory_space<vmem>>, vector<32x32xf32>
    %c96 = arith.constant 96 : index
    %c0_3 = arith.constant 0 : index
    %3 = vector.load %arg2[%c96, %c0_3] : memref<272x128xf32, #tpu.memory_space<vmem>>, vector<32x32xf32>
    %c128 = arith.constant 128 : index
    %c0_4 = arith.constant 0 : index
    %4 = vector.load %arg2[%c128, %c0_4] : memref<272x128xf32, #tpu.memory_space<vmem>>, vector<8x32xf32>
    %c136 = arith.constant 136 : index
    %c0_5 = arith.constant 0 : index
    %5 = vector.load %arg2[%c136, %c0_5] : memref<272x128xf32, #tpu.memory_space<vmem>>, vector<32x32xf32>
    %c168 = arith.constant 168 : index
    %c0_6 = arith.constant 0 : index
    %6 = vector.load %arg2[%c168, %c0_6] : memref<272x128xf32, #tpu.memory_space<vmem>>, vector<32x32xf32>
    %c200 = arith.constant 200 : index
    %c0_7 = arith.constant 0 : index
    %7 = vector.load %arg2[%c200, %c0_7] : memref<272x128xf32, #tpu.memory_space<vmem>>, vector<32x32xf32>
    %c232 = arith.constant 232 : index
    %c0_8 = arith.constant 0 : index
    %8 = vector.load %arg2[%c232, %c0_8] : memref<272x128xf32, #tpu.memory_space<vmem>>, vector<32x128xf32>
    %c264 = arith.constant 264 : index
    %c0_9 = arith.constant 0 : index
    %9 = vector.load %arg2[%c264, %c0_9] : memref<272x128xf32, #tpu.memory_space<vmem>>, vector<1x32xf32>
    %c265 = arith.constant 265 : index
    %c0_10 = arith.constant 0 : index
    %10 = vector.load %arg2[%c265, %c0_10] : memref<272x128xf32, #tpu.memory_space<vmem>>, vector<1x32xf32>
    %c266 = arith.constant 266 : index
    %c0_11 = arith.constant 0 : index
    %11 = vector.load %arg2[%c266, %c0_11] : memref<272x128xf32, #tpu.memory_space<vmem>>, vector<1x32xf32>
    %c267 = arith.constant 267 : index
    %c0_12 = arith.constant 0 : index
    %12 = vector.load %arg2[%c267, %c0_12] : memref<272x128xf32, #tpu.memory_space<vmem>>, vector<1x32xf32>
    %c268 = arith.constant 268 : index
    %c0_13 = arith.constant 0 : index
    %13 = vector.load %arg2[%c268, %c0_13] : memref<272x128xf32, #tpu.memory_space<vmem>>, vector<1x32xf32>
    %c269 = arith.constant 269 : index
    %c0_14 = arith.constant 0 : index
    %14 = vector.load %arg2[%c269, %c0_14] : memref<272x128xf32, #tpu.memory_space<vmem>>, vector<1x32xf32>
    %c270 = arith.constant 270 : index
    %c0_15 = arith.constant 0 : index
    %15 = vector.load %arg2[%c270, %c0_15] : memref<272x128xf32, #tpu.memory_space<vmem>>, vector<1x32xf32>
    %c271 = arith.constant 271 : index
    %c0_16 = arith.constant 0 : index
    %16 = vector.load %arg2[%c271, %c0_16] : memref<272x128xf32, #tpu.memory_space<vmem>>, vector<1x128xf32>
    %c0_17 = arith.constant 0 : index
    %c0_18 = arith.constant 0 : index
    %c0_19 = arith.constant 0 : index
    %17 = vector.load %arg1[%c0_17, %c0_18, %c0_19] : memref<2x8x32xf32, #tpu.memory_space<vmem>>, vector<2x8x32xf32>
    %cst = arith.constant 0.000000e+00 : f32
    %18 = vector.broadcast %cst : f32 to vector<2x8x32xf32>
    %19 = arith.maximumf %17, %18 : vector<2x8x32xf32>
    %20 = vector.shape_cast %19 : vector<2x8x32xf32> to vector<16x32xf32>
    %cst_20 = arith.constant dense<0.000000e+00> : vector<16x32xf32>
    %21 = tpu.matmul %20, %0, %cst_20 {dimension_numbers = #tpu.dot_dimension_numbers<[1], [0], [0], [1], [0, 0, 1, 1], [], []>} : vector<16x32xf32>, vector<32x32xf32>, vector<16x32xf32> -> vector<16x32xf32>
    %22 = vector.broadcast %9 : vector<1x32xf32> to vector<16x32xf32>
    %23 = arith.addf %21, %22 : vector<16x32xf32>
    %24 = vector.shape_cast %23 : vector<16x32xf32> to vector<2x8x32xf32>
    %cst_21 = arith.constant dense<0.000000e+00> : vector<16x32xf32>
    %25 = tpu.matmul %20, %1, %cst_21 {dimension_numbers = #tpu.dot_dimension_numbers<[1], [0], [0], [1], [0, 0, 1, 1], [], []>} : vector<16x32xf32>, vector<32x32xf32>, vector<16x32xf32> -> vector<16x32xf32>
    %26 = vector.broadcast %10 : vector<1x32xf32> to vector<16x32xf32>
    %27 = arith.addf %25, %26 : vector<16x32xf32>
    %28 = vector.shape_cast %27 : vector<16x32xf32> to vector<2x8x32xf32>
    %cst_22 = arith.constant dense<0.000000e+00> : vector<16x32xf32>
    %29 = tpu.matmul %20, %2, %cst_22 {dimension_numbers = #tpu.dot_dimension_numbers<[1], [0], [0], [1], [0, 0, 1, 1], [], []>} : vector<16x32xf32>, vector<32x32xf32>, vector<16x32xf32> -> vector<16x32xf32>
    %30 = vector.broadcast %11 : vector<1x32xf32> to vector<16x32xf32>
    %31 = arith.addf %29, %30 : vector<16x32xf32>
    %32 = vector.shape_cast %31 : vector<16x32xf32> to vector<2x8x32xf32>
    "tpu.trace_start"() <{level = 10 : i32, message = "blc,bmc->blm"}> : () -> ()
    %cst_23 = arith.constant dense<0.000000e+00> : vector<2x8x8xf32>
    %33 = tpu.matmul %24, %28, %cst_23 {dimension_numbers = #tpu.dot_dimension_numbers<[2], [2], [1], [1], [0, 0, 0, 1, 1, 1], [0], [0]>} : vector<2x8x32xf32>, vector<2x8x32xf32>, vector<2x8x8xf32> -> vector<2x8x8xf32>
    "tpu.trace_stop"() : () -> ()
    %cst_24 = arith.constant dense<0xFF800000> : vector<2x8xf32>
    %34 = vector.multi_reduction <maximumf>, %33, %cst_24 [2] : vector<2x8x8xf32> to vector<2x8xf32>
    %35 = vector.shape_cast %34 : vector<2x8xf32> to vector<2x8x1xf32>
    %36 = vector.broadcast %35 : vector<2x8x1xf32> to vector<2x8x8xf32>
    %37 = arith.subf %33, %36 : vector<2x8x8xf32>
    %38 = math.exp %37 : vector<2x8x8xf32>
    %cst_25 = arith.constant dense<0.000000e+00> : vector<2x8xf32>
    %39 = vector.multi_reduction <add>, %38, %cst_25 [2] : vector<2x8x8xf32> to vector<2x8xf32>
    %40 = vector.shape_cast %39 : vector<2x8xf32> to vector<2x8x1xf32>
    %41 = tpu.reciprocal %40 {approx = true} : vector<2x8x1xf32> -> vector<2x8x1xf32>
    %42 = vector.broadcast %41 : vector<2x8x1xf32> to vector<2x8x8xf32>
    %43 = arith.mulf %38, %42 : vector<2x8x8xf32>
    "tpu.trace_start"() <{level = 10 : i32, message = "blm,bmc->blc"}> : () -> ()
    %cst_26 = arith.constant dense<0.000000e+00> : vector<2x8x32xf32>
    %44 = tpu.matmul %43, %32, %cst_26 {dimension_numbers = #tpu.dot_dimension_numbers<[2], [1], [1], [2], [0, 0, 0, 1, 1, 2], [0], [0]>} : vector<2x8x8xf32>, vector<2x8x32xf32>, vector<2x8x32xf32> -> vector<2x8x32xf32>
    "tpu.trace_stop"() : () -> ()
    %cst_27 = arith.constant 0.000000e+00 : f32
    %45 = vector.broadcast %cst_27 : f32 to vector<2x8x32xf32>
    %46 = arith.maximumf %44, %45 : vector<2x8x32xf32>
    %47 = vector.shape_cast %46 : vector<2x8x32xf32> to vector<16x32xf32>
    %cst_28 = arith.constant dense<0.000000e+00> : vector<16x32xf32>
    %48 = tpu.matmul %47, %3, %cst_28 {dimension_numbers = #tpu.dot_dimension_numbers<[1], [0], [0], [1], [0, 0, 1, 1], [], []>} : vector<16x32xf32>, vector<32x32xf32>, vector<16x32xf32> -> vector<16x32xf32>
    %49 = vector.broadcast %12 : vector<1x32xf32> to vector<16x32xf32>
    %50 = arith.addf %48, %49 : vector<16x32xf32>
    %51 = vector.shape_cast %50 : vector<16x32xf32> to vector<2x8x32xf32>
    %52 = arith.addf %17, %51 : vector<2x8x32xf32>
    %cst_29 = arith.constant dense<0.000000e+00> : vector<2x32xf32>
    %53 = vector.multi_reduction <add>, %52, %cst_29 [1] : vector<2x8x32xf32> to vector<2x32xf32>
    %cst_30 = arith.constant 8.000000e+00 : f32
    %54 = vector.broadcast %cst_30 : f32 to vector<2x32xf32>
    %55 = arith.divf %53, %54 : vector<2x32xf32>
    %c0_31 = arith.constant 0 : index
    %c0_32 = arith.constant 0 : index
    %56 = vector.load %arg0[%c0_31, %c0_32] : memref<2x8xf32, #tpu.memory_space<vmem>>, vector<2x8xf32>
    %cst_33 = arith.constant dense<0.000000e+00> : vector<2x32xf32>
    %57 = tpu.matmul %56, %4, %cst_33 {dimension_numbers = #tpu.dot_dimension_numbers<[1], [0], [0], [1], [0, 0, 1, 1], [], []>} : vector<2x8xf32>, vector<8x32xf32>, vector<2x32xf32> -> vector<2x32xf32>
    %cst_34 = arith.constant dense<0.000000e+00> : vector<2x32xf32>
    %58 = tpu.matmul %55, %5, %cst_34 {dimension_numbers = #tpu.dot_dimension_numbers<[1], [0], [0], [1], [0, 0, 1, 1], [], []>} : vector<2x32xf32>, vector<32x32xf32>, vector<2x32xf32> -> vector<2x32xf32>
    %59 = arith.addf %57, %58 : vector<2x32xf32>
    %60 = vector.broadcast %13 : vector<1x32xf32> to vector<2x32xf32>
    %61 = arith.addf %59, %60 : vector<2x32xf32>
    %cst_35 = arith.constant 0.000000e+00 : f32
    %62 = vector.broadcast %cst_35 : f32 to vector<2x32xf32>
    %63 = arith.maximumf %61, %62 : vector<2x32xf32>
    %cst_36 = arith.constant dense<0.000000e+00> : vector<2x32xf32>
    %64 = tpu.matmul %63, %6, %cst_36 {dimension_numbers = #tpu.dot_dimension_numbers<[1], [0], [0], [1], [0, 0, 1, 1], [], []>} : vector<2x32xf32>, vector<32x32xf32>, vector<2x32xf32> -> vector<2x32xf32>
    %65 = vector.broadcast %14 : vector<1x32xf32> to vector<2x32xf32>
    %66 = arith.addf %64, %65 : vector<2x32xf32>
    %cst_37 = arith.constant 0.000000e+00 : f32
    %67 = vector.broadcast %cst_37 : f32 to vector<2x32xf32>
    %68 = arith.maximumf %66, %67 : vector<2x32xf32>
    %cst_38 = arith.constant dense<0.000000e+00> : vector<2x32xf32>
    %69 = tpu.matmul %68, %7, %cst_38 {dimension_numbers = #tpu.dot_dimension_numbers<[1], [0], [0], [1], [0, 0, 1, 1], [], []>} : vector<2x32xf32>, vector<32x32xf32>, vector<2x32xf32> -> vector<2x32xf32>
    %70 = vector.broadcast %15 : vector<1x32xf32> to vector<2x32xf32>
    %71 = arith.addf %69, %70 : vector<2x32xf32>
    %72 = arith.addf %61, %71 : vector<2x32xf32>
    %cst_39 = arith.constant 0.000000e+00 : f32
    %73 = vector.broadcast %cst_39 : f32 to vector<2x32xf32>
    %74 = arith.maximumf %72, %73 : vector<2x32xf32>
    %cst_40 = arith.constant dense<0.000000e+00> : vector<2x128xf32>
    %75 = tpu.matmul %74, %8, %cst_40 {dimension_numbers = #tpu.dot_dimension_numbers<[1], [0], [0], [1], [0, 0, 1, 1], [], []>} : vector<2x32xf32>, vector<32x128xf32>, vector<2x128xf32> -> vector<2x128xf32>
    %76 = vector.broadcast %16 : vector<1x128xf32> to vector<2x128xf32>
    %77 = arith.addf %75, %76 : vector<2x128xf32>
    %c0_41 = arith.constant 0 : index
    %c0_42 = arith.constant 0 : index
    %78 = vector.load %arg3[%c0_41, %c0_42] : memref<2x128xf32, #tpu.memory_space<vmem>>, vector<2x128xf32>
    tpu.vector_store %arg3[%c0_41, %c0_42], %77 {strides = array<i32>} : memref<2x128xf32, #tpu.memory_space<vmem>>, vector<2x128xf32>,
    return
  }
}

</mosaic_0001>

<bundles_post_ra>
// kernel: tpu_custom_call.1
= control target key start
LH: loop header
LB: loop body
LE: loop exit
PB: predicated region body
PF: predicated region fallthrough
CT: control target
= control target key end

     0   :  { %8 = vsyncpa [#allocation3], 0  ;;  %s727_s0 = inlined_call_operand.hbm [shape: f32[2,8], index: 0, kind: input, shape index: {}]   ;;  %s728_s1 = inlined_call_operand.hbm [shape: f32[2,8,32], index: 1, kind: input, shape index: {}]   ;;  %s729_s2 = inlined_call_operand.hbm [shape: f32[272,128], index: 2, kind: input, shape index: {}]   ;;  %s730_s3 = inlined_call_operand.hbm [shape: f32[2,128], index: 3, kind: output, shape index: {}]  }
   0x1   :  { %9 = vsyncpa [#allocation6], 0  ;;  %s26_s14 = sshll.u32 %s728_s1, 4  ;;  %s27_s14 = int_to_ptr.hbm [resolvable:$true] %s26_s14 }
   0x2   :  { %10 = vsyncpa [#allocation4], 0  ;;  %s655_s15 = smov [#allocation5]   ;;  %s16_s19 = sshll.u32 %s727_s0, 4  ;;  %s17_s19 = int_to_ptr.hbm [resolvable:$true] %s16_s19 }
   0x3   :  { %s28_s16 = sshll.u32 %s655_s15, 4  ;;  %s656_s20 = smov 128   ;;  %s29_s16 = int_to_ptr.vmem [resolvable:$true] %s28_s16 }
   0x4   :  { %s657_s21 = smov 8   ;;  %s658_s22 = smov [#allocation2]  }
   0x5   :  { %34 = dma.hbm_to_vmem [thread:$0]  %s27_s14, 256, %s29_s16, [#allocation6], %s656_s20, %s656_s20, %s657_s21  }
   0x6   :  { %s18_s23 = sshll.u32 %s658_s22, 4  ;;  %s39_s26 = sshll.u32 %s729_s2, 4  ;;  %s19_s23 = int_to_ptr.vmem [resolvable:$true] %s18_s23  ;;  %s40_s26 = int_to_ptr.hbm [resolvable:$true] %s39_s26 }
   0x7   :  { %21 = dma.hbm_to_vmem [thread:$0]  %s17_s19, 32, %s19_s23, [#allocation3]  }
   0x8   :  { %s659_s1 = smov [#allocation7]  }
   0x9   :  { %s41_s27 = sshll.u32 %s659_s1, 4  ;;  %s42_s27 = int_to_ptr.vmem [resolvable:$true] %s41_s27 }
   0xa   :  { %47 = dma.hbm_to_vmem [thread:$0]  %s40_s26, 4352, %s42_s27, [#allocation6], %s656_s20, %s656_s20, %s657_s21  }
   0xb   :  { %649 = dma.done.wait [#allocation3], 32  }
   0xc   :  { %650 = vsyncadd [#allocation3], 4294967264 }
   0xd   :  { %651 = dma.done.wait [#allocation6], 4608  }
   0xe   :  { %652 = vsyncadd [#allocation6], 4294962688  ;;  %v67_v0 = vld [vmem:[#allocation7 + $0x38] sm:$0xff]  ;;  %v66_v1 = vld [vmem:[#allocation7 + $0x30] sm:$0xff]  ;;  %vm106_vm0 = vcmask 261120   ;;  %vm236_vm1 = vcmask 64512  }
   0xf   :  { %v63_v2 = vld [vmem:[#allocation7 + $0x18] sm:$0xff]  ;;  %149 = vmatpush.msra.mxu1 %v67_v0  ;;  %v62_v3 = vld [vmem:[#allocation7 + $0x10] sm:$0xff]  ;;  %v65_v4 = vld [vmem:[#allocation7 + $0x28] sm:$0xff]  ;;  %vm365_vm3 = vcmask 1041409   ;;  %s661_s0 = smov [#allocation8]   ;;  %s498_s30 = sshll.u32 %s730_s3, 4  ;;  %s499_s30 = int_to_ptr.hbm [resolvable:$true] %s498_s30 }
  0x10   :  { %125 = vmatpush.msra.mxu0 %v63_v2  ;;  %v61_v5 = vld [vmem:[#allocation7 + $0x8] sm:$0xff]  ;;  %v691_v6 = vld [vmem:[#allocation5] sm:$0xff]  ;;  %v64_v7 = vld [vmem:[#allocation7 + $0x20] sm:$0xff]  ;;  %s496_s2 = sshll.u32 %s661_s0, 4  ;;  %s497_s2 = int_to_ptr.vmem [resolvable:$true] %s496_s2 }
  0x11   :  { %150 = vmatpush.msra.mxu1 %v66_v1  ;;  %v103_v8 = vmax.f32 %v691_v6, 0.0  ;;  %v60_v9 = vld [vmem:[#allocation7] sm:$0xff]  ;;  %v696_v10 = vld [vmem:[#allocation5 + $0x8] sm:$0xff]  ;;  %v535_v12 = vld [vmem:[#allocation7 + $0x109] ss:$0 sm:$0xff] }
  0x12   :  { %126 = vmatpush.msra.mxu0 %v62_v3  ;;  %v104_v11 = vmax.f32 %v696_v10, 0.0  ;;  %v536_v13 = vld [vmem:[#allocation7 + $0x108] ss:$0 sm:$0xff]  ;;  %v71_v22 = vld [vmem:[#allocation7 + $0x58] sm:$0xff]  ;;  %v70_v23 = vld [vmem:[#allocation7 + $0x50] sm:$0xff]  ;;  %v660_v3 = vmov 8.0  }
  0x13   :  { %151 = vmatpush.msra.mxu1 %v65_v4  ;;  %173 = vmatpush.msra.mxu2 %v71_v22  ;;  %v69_v24 = vld [vmem:[#allocation7 + $0x48] sm:$0xff]  ;;  %v68_v25 = vld [vmem:[#allocation7 + $0x40] sm:$0xff]  ;;  %v75_v45 = vld [vmem:[#allocation7 + $0x78] sm:$0xff] }
  0x14   :  { %127 = vmatpush.msra.mxu0 %v61_v5  ;;  %v537_v30 = vld [vmem:[#allocation7 + $0x10a] ss:$0 sm:$0xff]  ;;  %v74_v46 = vld [vmem:[#allocation7 + $0x70] sm:$0xff]  ;;  %v72_v48 = vld [vmem:[#allocation7 + $0x60] sm:$0xff] }
  0x15   :  { %152 = vmatpush.msra.mxu1 %v64_v7  ;;  %174 = vmatpush.msra.mxu2 %v70_v23  ;;  %v73_v47 = vld [vmem:[#allocation7 + $0x68] sm:$0xff]  ;;  %v80_v59 = vld [vmem:[#allocation7 + $0xa0] sm:$0xff]  ;;  %v79_v60 = vld [vmem:[#allocation7 + $0x98] sm:$0xff] }
  0x16   :  { %128 = vmatpush.msra.mxu0 %v60_v9  ;;  %511 = vmatmul.msk.f32.vlgmr.msra.gmra.mxu1 %vm106_vm0, %v103_v8  ;;  %v78_v61 = vld [vmem:[#allocation7 + $0x90] sm:$0xff]  ;;  %v76_v62 = vld [vmem:[#allocation7 + $0x80] sm:$0xff]  ;;  %v77_v63 = vld [vmem:[#allocation7 + $0x88] sm:$0xff] }
  0x17   :  { %509 = vmatmul.msk.f32.vlgmr.msra.gmra.mxu0 %vm106_vm0, %v103_v8  ;;  %175 = vmatpush.msra.mxu2 %v69_v24  ;;  %v362_v0 = vld [vmem:[#allocation2] sm:$0x3]  ;;  %v538_v1 = vld [vmem:[#allocation7 + $0x10b] ss:$0 sm:$0xff]  ;;  %v84_v2 = vld [vmem:[#allocation7 + $0xc0] sm:$0xff] }
  0x18   :  { %326 = vmatpush.msrb.mxu1 %v75_v45  ;;  %v85_v45 = vld [vmem:[#allocation7 + $0xc8] sm:$0xff] }
  0x19   :  { %176 = vmatpush.msra.mxu2 %v68_v25 }
  0x1a   :  { %513 = vmatmul.msk.f32.vlgmr.msra.gmra.mxu2 %vm106_vm0, %v103_v8  ;;  %327 = vmatpush.msrb.mxu1 %v74_v46  ;;  %v92_v46 = vld [vmem:[#allocation7 + $0x100] sm:$0xff] }
  0x1b   :  { %381 = vmatpush.msrb.mxu2 %v80_v59  ;;  %v542_v59 = vld [vmem:[#allocation7 + $0x10f] ss:$0 sm:$0xff] }
  0x1c   :  { %328 = vmatpush.msrb.mxu1 %v73_v47  ;;  %v540_v47 = vld [vmem:[#allocation7 + $0x10d] ss:$0 sm:$0xff] }
  0x1d   :  { %382 = vmatpush.msrb.mxu2 %v79_v60 }
  0x1e   :  { %512 = vmatmul.msk.f32.gmra.mxu1 %vm106_vm0, %v104_v11 }
  0x1f   :  { %510 = vmatmul.msk.f32.gmra.mxu0 %vm106_vm0, %v104_v11  ;;  %329 = vmatpush.msrb.mxu1 %v72_v48 }
  0x20   :  { %383 = vmatpush.msrb.mxu2 %v78_v61 }
  0x22   :  { %514 = vmatmul.msk.f32.gmra.mxu2 %vm106_vm0, %v104_v11 }
  0x23   :  { %384 = vmatpush.msrb.mxu2 %v77_v63 }
  0x93   :  { %v154_v14 = vpop.f32.mrf.mxu1 }
  0x94   :  { %v130_v15 = vpop.f32.mrf.mxu0  ;;  %v155_v16 = vadd.f32 %v535_v12, %v154_v14 }
  0x95   :  { %v131_v17 = vadd.f32 %v536_v13, %v130_v15 }
  0x96   :  { %515 = vmatpush.xpose.msk.msra.mxu3 %vm106_vm0, %v155_v16 }
  0x99   :  { %516 = vmatmul.msk.f32.vlgmr.msra.gmra.mxu3 %vm106_vm0, %v131_v17 }
  0x9b   :  { %v157_v18 = vpop.f32.mrf.mxu1 }
  0x9c   :  { %v133_v19 = vpop.f32.mrf.mxu0  ;;  %v158_v20 = vadd.f32 %v535_v12, %v157_v18 }
  0x9d   :  { %v134_v21 = vadd.f32 %v536_v13, %v133_v19  ;;  %v178_v32 = vpop.f32.mrf.mxu2 }
  0x9e   :  { %517 = vmatpush.xpose.msk.msrb.mxu3 %vm106_vm0, %v158_v20  ;;  %v179_v34 = vadd.f32 %v537_v30, %v178_v32 }
  0xa1   :  { %518 = vmatmul.msk.f32.vlgmr.msrb.gmra.mxu3 %vm106_vm0, %v134_v21 }
  0xa2   :  { %277 = vmatpush.msra.mxu3 %v179_v34  ;;  %v82_v34 = vld [vmem:[#allocation7 + $0xb0] sm:$0xff] }
  0xa4   :  { %407 = vmatpush.msrb.mxu3 %v76_v62 }
  0xa5   :  { %v181_v43 = vpop.f32.mrf.mxu2 }
  0xa6   :  { %v182_v44 = vadd.f32 %v537_v30, %v181_v43 }
  0xa8   :  { %300 = vmatpush.msrb.mxu0 %v182_v44  ;;  %v86_v44 = vld [vmem:[#allocation7 + $0xd0] sm:$0xff] }
  0xaa   :  { %431 = vmatpush.msra.mxu0 %v84_v2 }
 0x11c   :  { %v207_v26 = vpop.f32.mrf.mxu3 }
 0x11d   :  { %v237_v27 = vsel %vm236_vm1, %v207_v26, -inf }
 0x11e   :  { %238 = vmax.xlane.f32.xlu0 %v237_v27 }
 0x124   :  { %v233_v28 = vpop.f32.mrf.mxu3 }
 0x125   :  { %v240_v29 = vsel %vm236_vm1, %v233_v28, -inf }
 0x126   :  { %241 = vmax.xlane.f32.xlu0 %v240_v29 }
 0x191   :  { %v239_v31 = vpop.xlane.xlu0 %238 }
 0x192   :  { %v243_v33 = vsub.f32 %v207_v26, %v239_v31 }
 0x194   :  { %v245_v35 = vmul.f32 1.442695, %v243_v33  ;;  %v83_v33 = vld [vmem:[#allocation7 + $0xb8] sm:$0xff] }
 0x195   :  { %432 = vmatpush.msra.mxu0 %v83_v33 }
 0x196   :  { %543 = vpow2.f32 %v245_v35  ;;  %v81_v35 = vld [vmem:[#allocation7 + $0xa8] sm:$0xff] }
 0x197   :  { %433 = vmatpush.msra.mxu0 %v82_v34 }
 0x199   :  { %v242_v36 = vpop.xlane.xlu0 %241  ;;  %434 = vmatpush.msra.mxu0 %v81_v35 }
 0x19a   :  { %v244_v37 = vsub.f32 %v233_v28, %v242_v36  ;;  %v88_v36 = vld [vmem:[#allocation7 + $0xe0] sm:$0xff] }
 0x19b   :  { %456 = vmatpush.msra.mxu2 %v88_v36 }
 0x19c   :  { %v544_v38 = vpop.eup %543  ;;  %v247_v39 = vmul.f32 1.442695, %v244_v37  ;;  %v87_v37 = vld [vmem:[#allocation7 + $0xd8] sm:$0xff] }
 0x19d   :  { %v249_v40 = vsel %vm236_vm1, %v544_v38, 0.0  ;;  %457 = vmatpush.msra.mxu2 %v87_v37 }
 0x19e   :  { %545 = vpow2.f32 %v247_v39  ;;  %250 = vadd.xlane.f32.xlu1 %v249_v40  ;;  %v539_v39 = vld [vmem:[#allocation7 + $0x10c] ss:$0 sm:$0xff] }
 0x19f   :  { %458 = vmatpush.msra.mxu2 %v86_v44 }
 0x1a1   :  { %459 = vmatpush.msra.mxu2 %v85_v45 }
 0x1a4   :  { %v546_v41 = vpop.eup %545 }
 0x1a5   :  { %v252_v42 = vsel %vm236_vm1, %v546_v41, 0.0 }
 0x1a6   :  { %253 = vadd.xlane.f32.xlu1 %v252_v42 }
 0x211   :  { %v251_v49 = vpop.xlane.xlu1 %250 }
 0x212   :  { %547 = vrcp.f32 %v251_v49 }
 0x218   :  { %v548_v50 = vpop.eup %547 }
 0x219   :  { %v257_v51 = vmul.f32 %v548_v50, %v544_v38  ;;  %v254_v52 = vpop.xlane.xlu1 %253 }
 0x21a   :  { %549 = vrcp.f32 %v254_v52  ;;  %v90_v52 = vld [vmem:[#allocation7 + $0xf0] sm:$0xff] }
 0x21b   :  { %519 = vmatmul.msk.f32.vlgmr.msra.gmra.mxu3 %vm236_vm1, %v257_v51  ;;  %551 = vrcp.f32 %v660_v3  ;;  %v91_v51 = vld [vmem:[#allocation7 + $0xf8] sm:$0xff] }
 0x21c   :  { %482 = vmatpush.msra.mxu3 %v92_v46 }
 0x21e   :  { %483 = vmatpush.msra.mxu3 %v91_v51 }
 0x220   :  { %v550_v53 = vpop.eup %549  ;;  %484 = vmatpush.msra.mxu3 %v90_v52 }
 0x221   :  { %v258_v54 = vmul.f32 %v550_v53, %v546_v41  ;;  %v552_v8 = vpop.eup %551  ;;  %v89_v53 = vld [vmem:[#allocation7 + $0xe8] sm:$0xff] }
 0x222   :  { %v354_v12 = vmul.f32 8.0, %v552_v8  ;;  %vm358_vm2 = vweird.f32 %v552_v8  ;;  %485 = vmatpush.msra.mxu3 %v89_v53 }
 0x223   :  { %520 = vmatmul.msk.f32.vlgmr.msrb.gmra.mxu0 %vm236_vm1, %v258_v54  ;;  %524 = vmatmul.msk.f32.vlgmr.msrb.gmra.mxu3 %vm236_vm1, %v362_v0  ;;  %v541_v54 = vld [vmem:[#allocation7 + $0x10e] ss:$0 sm:$0xff] }
 0x224   :  { %v355_v18 = vsub.f32 1.0, %v354_v12 }
 0x226   :  { %v356_v22 = vmul.f32 %v552_v8, %v355_v18 }
 0x228   :  { %v357_v25 = vadd.f32 %v552_v8, %v356_v22 }
 0x22a   :  { %v359_v29 = vsel %vm358_vm2, %v552_v8, %v357_v25 }
 0x29e   :  { %v279_v55 = vpop.f32.mrf.mxu3 }
 0x29f   :  { %v305_v56 = vmax.f32 %v279_v55, 0.0 }
 0x2a0   :  { %v302_v57 = vpop.f32.mrf.mxu0 }
 0x2a1   :  { %521 = vmatmul.msk.f32.vlgmr.msrb.gmra.mxu1 %vm106_vm0, %v305_v56  ;;  %v306_v58 = vmax.f32 %v302_v57, 0.0 }
 0x2a6   :  { %v409_v38 = vpop.f32.mrf.mxu3 }
 0x2a9   :  { %522 = vmatmul.msk.f32.gmra.mxu1 %vm106_vm0, %v306_v58 }
 0x31e   :  { %v331_v4 = vpop.f32.mrf.mxu1 }
 0x31f   :  { %v332_v5 = vadd.f32 %v538_v1, %v331_v4 }
 0x321   :  { %v337_v7 = vadd.f32 %v332_v5, %v691_v6 }
 0x323   :  { %v339_v9 = vsel %vm106_vm0, %v337_v7, 0.0 }
 0x324   :  { %v340_v11 = vrot.slane %v339_v9, 4 }
 0x326   :  { %v341_v13 = vadd.f32 %v340_v11, %v339_v9  ;;  %v334_v14 = vpop.f32.mrf.mxu1 }
 0x327   :  { %v335_v15 = vadd.f32 %v538_v1, %v334_v14 }
 0x328   :  { %v342_v16 = vrot.slane %v341_v13, 2 }
 0x329   :  { %v338_v17 = vadd.f32 %v335_v15, %v696_v10 }
 0x32a   :  { %v343_v20 = vadd.f32 %v342_v16, %v341_v13 }
 0x32b   :  { %v346_v19 = vsel %vm106_vm0, %v338_v17, 0.0 }
 0x32c   :  { %v347_v21 = vrot.slane %v346_v19, 4  ;;  %v344_v24 = vrot.slane %v343_v20, 1 }
 0x32e   :  { %v348_v23 = vadd.f32 %v347_v21, %v346_v19  ;;  %v345_v27 = vadd.f32 %v344_v24, %v343_v20 }
 0x330   :  { %v349_v6 = vrot.slane %v348_v23, 2  ;;  %v360_v31 = vmul.f32 %v359_v29, %v345_v27 }
 0x332   :  { %v350_v26 = vadd.f32 %v349_v6, %v348_v23 }
 0x334   :  { %v351_v28 = vrot.slane %v350_v26, 1 }
 0x336   :  { %v352_v30 = vadd.f32 %v351_v28, %v350_v26 }
 0x338   :  { %v361_v32 = vmul.f32 %v359_v29, %v352_v30 }
 0x33a   :  { %v366_v10 = vsel %vm365_vm3, %v361_v32, %v360_v31 }
 0x33b   :  { %523 = vmatmul.msk.f32.vlgmr.msrb.gmra.mxu2 %vm106_vm0, %v366_v10 }
 0x3be   :  { %v386_v40 = vpop.f32.mrf.mxu2 }
 0x3bf   :  { %v410_v41 = vadd.f32 %v409_v38, %v386_v40 }
 0x3c1   :  { %v413_v42 = vadd.f32 %v539_v39, %v410_v41 }
 0x3c3   :  { %v414_v43 = vmax.f32 %v413_v42, 0.0 }
 0x3c5   :  { %525 = vmatmul.msk.f32.vlgmr.msra.gmra.mxu0 %vm106_vm0, %v414_v43 }
 0x442   :  { %v436_v48 = vpop.f32.mrf.mxu0 }
 0x443   :  { %v437_v49 = vadd.f32 %v540_v47, %v436_v48 }
 0x445   :  { %v439_v50 = vmax.f32 %v437_v49, 0.0 }
 0x447   :  { %526 = vmatmul.msk.f32.vlgmr.msra.gmra.mxu2 %vm106_vm0, %v439_v50 }
 0x4ca   :  { %v461_v55 = vpop.f32.mrf.mxu2 }
 0x4cb   :  { %v462_v56 = vadd.f32 %v541_v54, %v461_v55 }
 0x4cd   :  { %v464_v57 = vadd.f32 %v462_v56, %v413_v42 }
 0x4cf   :  { %v465_v58 = vmax.f32 %v464_v57, 0.0 }
 0x4d1   :  { %527 = vmatmul.msk.f32.vlgmr.msra.gmra.mxu3 %vm106_vm0, %v465_v58 }
 0x554   :  { %v487_v60 = vpop.f32.mrf.mxu3 }
 0x555   :  { %v488_v61 = vadd.f32 %v542_v59, %v487_v60 }
 0x557   :  { %490 = vst [vmem:[#allocation8] sm:$0x3] %v488_v61 }
 0x558   :  { %501 = dma.vmem_to_hbm [thread:$0]  %s497_s2, 32, %s499_s30, [#allocation4]  }
 0x559   :  { %653 = dma.done.wait [#allocation4], 32  }
 0x55a   :  { %654 = vsyncadd [#allocation4], 4294967264 }
 0x55b   :  { %506 = vsyncpa [#allocation3], 1 }
 0x55c   :  { %507 = vsyncpa [#allocation6], 1 }
 0x55d   :  { %508 = vsyncpa [#allocation4], 1 }

</bundles_post_ra>
